<compile_context>
chip_gen: v6e
topology: v6e:2x2x1
jax: 0.10.0
libtpu: 0.0.40
codegen_flags: <defaults>
</compile_context>

<pallas_src>
import functools

import numpy as np
import jax
import jax.numpy as jnp
from jax.experimental import pallas as pl
from jax.experimental.pallas import tpu as pltpu


def _issue_runs(x_refs, out_ref, sems, runs, nsem):
    """Issue one HBM->HBM DMA per (cluster, src_j, dst_c, run_len) run,
    keeping up to `nsem` copies in flight via a semaphore ring, then drain."""
    copies = []
    for q, (ci, j, c0, r) in enumerate(runs):
        slot = q % nsem
        if q >= nsem:                      # retire the copy that used this slot
            copies[q - nsem].wait()
        cp = pltpu.make_async_copy(
            x_refs[ci].at[:, pl.ds(j, r), :, :],
            out_ref.at[:, pl.ds(c0, r), :, :],
            sems.at[slot],
        )
        cp.start()
        copies.append(cp)
    for q in range(max(0, len(runs) - nsem), len(runs)):
        copies[q].wait()


def _make_static_kernel(runs_per_part, num_clusters, nsem):
    """Scatter kernel with a fully static, run-coalesced DMA issue schedule."""
    num_parts = len(runs_per_part)

    def kernel(*args):
        x_refs = args[:num_clusters]          # HBM refs, [B, n_i, L, D] each
        out_ref = args[num_clusters]          # HBM ref,  [B, C,   L, D]
        sems = args[num_clusters + 1]         # DMA semaphore ring (nsem,)
        if num_parts == 1:
            _issue_runs(x_refs, out_ref, sems, runs_per_part[0], nsem)
        else:
            part = pl.program_id(0)
            for k, part_runs in enumerate(runs_per_part):
                if not part_runs:
                    continue
                pl.when(part == k)(
                    functools.partial(
                        _issue_runs, x_refs, out_ref, sems, part_runs, nsem))

    return kernel


def _make_dynamic_kernel(n_per_cluster, nsem):
    """Fallback kernel: destination channels come from an SMEM table."""
    num_clusters = len(n_per_cluster)
    total = sum(n_per_cluster)

    def kernel(dst_ref, *args):
        x_refs = args[:num_clusters]
        out_ref = args[num_clusters]
        sems = args[num_clusters + 1]

        # Hoist all SMEM scalar reads above the first DMA wait.
        dst_vals = [dst_ref[p] for p in range(total)]

        copies = []
        p = 0
        for ci in range(num_clusters):
            for j in range(n_per_cluster[ci]):
                slot = p % nsem
                if p >= nsem:
                    copies[p - nsem].wait()
                cp = pltpu.make_async_copy(
                    x_refs[ci].at[:, pl.ds(j, 1), :, :],
                    out_ref.at[:, pl.ds(dst_vals[p], 1), :, :],
                    sems.at[slot],
                )
                cp.start()
                copies.append(cp)
                p += 1
        for q in range(max(0, p - nsem), p):
            copies[q].wait()

    return kernel


def restore(x_enc_hf, y_pred, B):
    """Pallas implementation of Restore.forward.

    x_enc_hf: list of [B, n_i, L, D] arrays (one per cluster id, in order).
    y_pred:   [enc_in] int array of cluster assignments.
    Returns:  [B, enc_in, L, D] array with channels restored to original order.
    """
    # Drop empty clusters (n_i == 0): they contribute no channels and their
    # omission does not change the cluster-major concatenation order.
    clusters = [x for x in x_enc_hf if x.shape[1] > 0]
    assert clusters, "at least one non-empty cluster required"
    Bsz, _, L, D = clusters[0].shape
    assert Bsz == B
    dtype = clusters[0].dtype
    for x in clusters:
        assert x.shape[0] == Bsz and x.shape[2] == L and x.shape[3] == D
        assert x.dtype == dtype
    enc_in = int(y_pred.shape[0])
    n_list = [int(x.shape[1]) for x in clusters]
    assert sum(n_list) == enc_in, "cluster sizes must cover all channels"

    itemsize = int(jnp.dtype(dtype).itemsize)
    cost = pl.CostEstimate(flops=0, transcendentals=0,
                           bytes_accessed=2 * Bsz * enc_in * L * D * itemsize)

    # ---------- static path: y_pred known on the host ----------------------
    y_np = None
    try:
        y_np = np.asarray(y_pred)
    except Exception:   # y_pred is a tracer -> dynamic fallback below
        y_np = None

    if y_np is not None:
        y_np = y_np.astype(np.int64)
        assert y_np.ndim == 1 and y_np.shape[0] == enc_in
        assert y_np.min() >= 0 and y_np.max() < len(x_enc_hf), \
            "y_pred contains out-of-range cluster ids"
        # Per-cluster count consistency (a mismatch would silently permute
        # wrongly / leave channels unwritten).
        for i, x in enumerate(x_enc_hf):
            cnt = int((y_np == i).sum())
            assert int(x.shape[1]) == cnt, (
                f"cluster {i}: x_enc_hf has {int(x.shape[1])} channels but "
                f"y_pred assigns {cnt}")

        # Concat position p (cluster-major, ascending channel within cluster)
        # holds original channel argsort(y_pred, stable)[p].
        dst_np = np.argsort(y_np, kind="stable")

        # Coalesce consecutive (src, dst) positions into runs.
        runs = []   # (cluster_idx_in_nonempty_list, src_j, dst_c, run_len)
        p = 0
        for k, n_i in enumerate(n_list):
            j = 0
            while j < n_i:
                c0 = int(dst_np[p])
                r = 1
                while j + r < n_i and int(dst_np[p + r]) == c0 + r:
                    r += 1
                runs.append((k, j, c0, r))
                j += r
                p += r

        # Split runs across 2 grid steps: on v7x (2 TCs) each core issues half
        # the descriptors; on v5e/v6e this is just 2 cheap sequential steps.
        num_parts = 2 if len(runs) >= 4 else 1
        if num_parts == 1:
            runs_per_part = [runs]
        else:
            runs_per_part = [[], []]
            loads = [0, 0]
            for run in runs:
                t = 0 if loads[0] <= loads[1] else 1
                runs_per_part[t].append(run)
                loads[t] += run[3]

        nsem = max(1, min(32, max(len(rp) for rp in runs_per_part)))
        kernel = _make_static_kernel(runs_per_part, len(clusters), nsem)
        return pl.pallas_call(
            kernel,
            out_shape=jax.ShapeDtypeStruct((Bsz, enc_in, L, D), dtype),
            grid_spec=pltpu.PrefetchScalarGridSpec(
                num_scalar_prefetch=0,
                grid=(num_parts,),
                in_specs=[pl.BlockSpec(memory_space=pl.ANY)] * len(clusters),
                out_specs=pl.BlockSpec(memory_space=pl.ANY),
                scratch_shapes=[pltpu.SemaphoreType.DMA((nsem,))],
            ),
            compiler_params=pltpu.CompilerParams(
                dimension_semantics=(
                    ("parallel",) if num_parts > 1 else ("arbitrary",)),
            ),
            cost_estimate=cost,
        )(*clusters)

    # ---------- dynamic fallback: y_pred is traced --------------------------
    dst = jnp.argsort(y_pred, stable=True).astype(jnp.int32)
    nsem = max(1, min(32, enc_in))
    kernel = _make_dynamic_kernel(n_list, nsem)
    return pl.pallas_call(
        kernel,
        out_shape=jax.ShapeDtypeStruct((Bsz, enc_in, L, D), dtype),
        grid_spec=pltpu.PrefetchScalarGridSpec(
            num_scalar_prefetch=1,
            grid=(1,),
            in_specs=[pl.BlockSpec(memory_space=pl.ANY)] * len(clusters),
            out_specs=pl.BlockSpec(memory_space=pl.ANY),
            scratch_shapes=[pltpu.SemaphoreType.DMA((nsem,))],
        ),
        compiler_params=pltpu.CompilerParams(
            dimension_semantics=("arbitrary",),
        ),
        cost_estimate=cost,
    )(dst, *clusters)


if __name__ == "__main__":
    # Small deterministic example.
    B = 2
    enc_in = 6
    L = 8          # hn
    d_model = 128
    num_cluster = 3

    key = jax.random.PRNGKey(0)
    key, k_pred = jax.random.split(key)
    y_pred = jax.random.randint(k_pred, (enc_in,), 0, num_cluster, dtype=jnp.int32)
    y_np = np.asarray(y_pred)

    # Build per-cluster encoded tensors x_enc_hf[i] : [B, n_i, L, d_model]
    x_enc_hf = []
    for i in range(num_cluster):
        n_i = int((y_np == i).sum())
        key, sub = jax.random.split(key)
        x_enc_hf.append(
            jax.random.normal(sub, (B, n_i, L, d_model), dtype=jnp.float32)
        )

    # Reference: literal translation of the PyTorch double loop.
    ref = np.zeros((B, enc_in, L, d_model), np.float32)
    for i, enc in enumerate(x_enc_hf):
        enc_np = np.asarray(enc)
        idxs = np.nonzero(y_np == i)[0]
        for j, idx in enumerate(idxs):
            ref[:, int(idx), :, :] = enc_np[:, j, :, :]

    # 1) Static (host-known y_pred) path: coalesced-run HBM->HBM DMAs.
    out = restore(x_enc_hf, y_pred, B)
    out = jax.block_until_ready(out)
    np.testing.assert_allclose(np.asarray(out), ref, rtol=0, atol=0)

    # 2) Dynamic fallback path (y_pred traced under jit).
    out2 = jax.jit(lambda xs, y: restore(xs, y, B))(x_enc_hf, y_pred)
    out2 = jax.block_until_ready(out2)
    np.testing.assert_allclose(np.asarray(out2), ref, rtol=0, atol=0)

    print("KERNEL_OK")
</pallas_src>

<mosaic_0001>
module attributes {stable_mosaic.version = 11 : i64} {
  func.func @kernel(%arg0: i32, %arg1: memref<2x2x8x128xf32, #tpu.memory_space<any>>, %arg2: memref<2x2x8x128xf32, #tpu.memory_space<any>>, %arg3: memref<2x2x8x128xf32, #tpu.memory_space<any>>, %arg4: memref<2x6x8x128xf32, #tpu.memory_space<any>>, %arg5: memref<3x!tpu.dma_semaphore, #tpu.memory_space<semaphore_mem>>) attributes {dimension_semantics = [#tpu.dimension_semantics<parallel>], iteration_bounds = array<i64: 2>, scalar_prefetch = 0 : i64, scratch_operands = 1 : i64, tpu.core_type = #tpu.core_type<tc>, window_params = [{}, {}, {}, {}]} {
    %c0_i32 = arith.constant 0 : i32
    %0 = arith.cmpi eq, %arg0, %c0_i32 : i32
    %1 = arith.extui %0 : i1 to i32
    %c0_i32_0 = arith.constant 0 : i32
    %2 = arith.cmpi ne, %1, %c0_i32_0 : i32
    scf.if %2 {
      %c0_i32_2 = arith.constant 0 : i32
      %c0_i32_3 = arith.constant 0 : i32
      %c0_i32_4 = arith.constant 0 : i32
      %c0_i32_5 = arith.constant 0 : i32
      %c0_i32_6 = arith.constant 0 : i32
      %6 = tpu.memref_slice %arg1[%c0_i32_3, %c0_i32_4, %c0_i32_5, %c0_i32_6] : memref<2x2x8x128xf32, #tpu.memory_space<any>> -> memref<2x1x8x128xf32, #tpu.memory_space<any>>
      %c0_i32_7 = arith.constant 0 : i32
      %c3_i32 = arith.constant 3 : i32
      %c0_i32_8 = arith.constant 0 : i32
      %c0_i32_9 = arith.constant 0 : i32
      %7 = tpu.memref_slice %arg4[%c0_i32_7, %c3_i32, %c0_i32_8, %c0_i32_9] : memref<2x6x8x128xf32, #tpu.memory_space<any>> -> memref<2x1x8x128xf32, #tpu.memory_space<any>>
      %8 = tpu.memref_slice %arg5[%c0_i32_2] : memref<3x!tpu.dma_semaphore, #tpu.memory_space<semaphore_mem>> -> memref<1x!tpu.dma_semaphore, #tpu.memory_space<semaphore_mem>>
      %9 = tpu.memref_squeeze %8 : memref<1x!tpu.dma_semaphore, #tpu.memory_space<semaphore_mem>> -> memref<!tpu.dma_semaphore, #tpu.memory_space<semaphore_mem>>
      tpu.enqueue_dma source(%6 : memref<2x1x8x128xf32, #tpu.memory_space<any>>) target(%7 : memref<2x1x8x128xf32, #tpu.memory_space<any>>) target_semaphore(%9 : memref<!tpu.dma_semaphore, #tpu.memory_space<semaphore_mem>>)
      %c1_i32_10 = arith.constant 1 : i32
      %c0_i32_11 = arith.constant 0 : i32
      %c0_i32_12 = arith.constant 0 : i32
      %c0_i32_13 = arith.constant 0 : i32
      %c0_i32_14 = arith.constant 0 : i32
      %10 = tpu.memref_slice %arg2[%c0_i32_11, %c0_i32_12, %c0_i32_13, %c0_i32_14] : memref<2x2x8x128xf32, #tpu.memory_space<any>> -> memref<2x2x8x128xf32, #tpu.memory_space<any>>
      %c0_i32_15 = arith.constant 0 : i32
      %c1_i32_16 = arith.constant 1 : i32
      %c0_i32_17 = arith.constant 0 : i32
      %c0_i32_18 = arith.constant 0 : i32
      %11 = tpu.memref_slice %arg4[%c0_i32_15, %c1_i32_16, %c0_i32_17, %c0_i32_18] : memref<2x6x8x128xf32, #tpu.memory_space<any>> -> memref<2x2x8x128xf32, #tpu.memory_space<any>>
      %12 = tpu.memref_slice %arg5[%c1_i32_10] : memref<3x!tpu.dma_semaphore, #tpu.memory_space<semaphore_mem>> -> memref<1x!tpu.dma_semaphore, #tpu.memory_space<semaphore_mem>>
      %13 = tpu.memref_squeeze %12 : memref<1x!tpu.dma_semaphore, #tpu.memory_space<semaphore_mem>> -> memref<!tpu.dma_semaphore, #tpu.memory_space<semaphore_mem>>
      tpu.enqueue_dma source(%10 : memref<2x2x8x128xf32, #tpu.memory_space<any>>) target(%11 : memref<2x2x8x128xf32, #tpu.memory_space<any>>) target_semaphore(%13 : memref<!tpu.dma_semaphore, #tpu.memory_space<semaphore_mem>>)
      %c0_i32_19 = arith.constant 0 : i32
      %c0_i32_20 = arith.constant 0 : i32
      %c0_i32_21 = arith.constant 0 : i32
      %c0_i32_22 = arith.constant 0 : i32
      %c0_i32_23 = arith.constant 0 : i32
      %14 = tpu.memref_slice %arg1[%c0_i32_20, %c0_i32_21, %c0_i32_22, %c0_i32_23] : memref<2x2x8x128xf32, #tpu.memory_space<any>> -> memref<2x1x8x128xf32, #tpu.memory_space<any>>
      %c0_i32_24 = arith.constant 0 : i32
      %c3_i32_25 = arith.constant 3 : i32
      %c0_i32_26 = arith.constant 0 : i32
      %c0_i32_27 = arith.constant 0 : i32
      %15 = tpu.memref_slice %arg4[%c0_i32_24, %c3_i32_25, %c0_i32_26, %c0_i32_27] : memref<2x6x8x128xf32, #tpu.memory_space<any>> -> memref<2x1x8x128xf32, #tpu.memory_space<any>>
      %16 = tpu.memref_slice %arg5[%c0_i32_19] : memref<3x!tpu.dma_semaphore, #tpu.memory_space<semaphore_mem>> -> memref<1x!tpu.dma_semaphore, #tpu.memory_space<semaphore_mem>>
      %17 = tpu.memref_squeeze %16 : memref<1x!tpu.dma_semaphore, #tpu.memory_space<semaphore_mem>> -> memref<!tpu.dma_semaphore, #tpu.memory_space<semaphore_mem>>
      tpu.wait_dma2 semaphore(%17 : memref<!tpu.dma_semaphore, #tpu.memory_space<semaphore_mem>>) src(%14 : memref<2x1x8x128xf32, #tpu.memory_space<any>>) dst(%15 : memref<2x1x8x128xf32, #tpu.memory_space<any>>)
      %c1_i32_28 = arith.constant 1 : i32
      %c0_i32_29 = arith.constant 0 : i32
      %c0_i32_30 = arith.constant 0 : i32
      %c0_i32_31 = arith.constant 0 : i32
      %c0_i32_32 = arith.constant 0 : i32
      %18 = tpu.memref_slice %arg2[%c0_i32_29, %c0_i32_30, %c0_i32_31, %c0_i32_32] : memref<2x2x8x128xf32, #tpu.memory_space<any>> -> memref<2x2x8x128xf32, #tpu.memory_space<any>>
      %c0_i32_33 = arith.constant 0 : i32
      %c1_i32_34 = arith.constant 1 : i32
      %c0_i32_35 = arith.constant 0 : i32
      %c0_i32_36 = arith.constant 0 : i32
      %19 = tpu.memref_slice %arg4[%c0_i32_33, %c1_i32_34, %c0_i32_35, %c0_i32_36] : memref<2x6x8x128xf32, #tpu.memory_space<any>> -> memref<2x2x8x128xf32, #tpu.memory_space<any>>
      %20 = tpu.memref_slice %arg5[%c1_i32_28] : memref<3x!tpu.dma_semaphore, #tpu.memory_space<semaphore_mem>> -> memref<1x!tpu.dma_semaphore, #tpu.memory_space<semaphore_mem>>
      %21 = tpu.memref_squeeze %20 : memref<1x!tpu.dma_semaphore, #tpu.memory_space<semaphore_mem>> -> memref<!tpu.dma_semaphore, #tpu.memory_space<semaphore_mem>>
      tpu.wait_dma2 semaphore(%21 : memref<!tpu.dma_semaphore, #tpu.memory_space<semaphore_mem>>) src(%18 : memref<2x2x8x128xf32, #tpu.memory_space<any>>) dst(%19 : memref<2x2x8x128xf32, #tpu.memory_space<any>>)
    } else {
    }
    %c1_i32 = arith.constant 1 : i32
    %3 = arith.cmpi eq, %arg0, %c1_i32 : i32
    %4 = arith.extui %3 : i1 to i32
    %c0_i32_1 = arith.constant 0 : i32
    %5 = arith.cmpi ne, %4, %c0_i32_1 : i32
    scf.if %5 {
      %c0_i32_2 = arith.constant 0 : i32
      %c0_i32_3 = arith.constant 0 : i32
      %c1_i32_4 = arith.constant 1 : i32
      %c0_i32_5 = arith.constant 0 : i32
      %c0_i32_6 = arith.constant 0 : i32
      %6 = tpu.memref_slice %arg1[%c0_i32_3, %c1_i32_4, %c0_i32_5, %c0_i32_6] : memref<2x2x8x128xf32, #tpu.memory_space<any>> -> memref<2x1x8x128xf32, #tpu.memory_space<any>>
      %c0_i32_7 = arith.constant 0 : i32
      %c5_i32 = arith.constant 5 : i32
      %c0_i32_8 = arith.constant 0 : i32
      %c0_i32_9 = arith.constant 0 : i32
      %7 = tpu.memref_slice %arg4[%c0_i32_7, %c5_i32, %c0_i32_8, %c0_i32_9] : memref<2x6x8x128xf32, #tpu.memory_space<any>> -> memref<2x1x8x128xf32, #tpu.memory_space<any>>
      %8 = tpu.memref_slice %arg5[%c0_i32_2] : memref<3x!tpu.dma_semaphore, #tpu.memory_space<semaphore_mem>> -> memref<1x!tpu.dma_semaphore, #tpu.memory_space<semaphore_mem>>
      %9 = tpu.memref_squeeze %8 : memref<1x!tpu.dma_semaphore, #tpu.memory_space<semaphore_mem>> -> memref<!tpu.dma_semaphore, #tpu.memory_space<semaphore_mem>>
      tpu.enqueue_dma source(%6 : memref<2x1x8x128xf32, #tpu.memory_space<any>>) target(%7 : memref<2x1x8x128xf32, #tpu.memory_space<any>>) target_semaphore(%9 : memref<!tpu.dma_semaphore, #tpu.memory_space<semaphore_mem>>)
      %c1_i32_10 = arith.constant 1 : i32
      %c0_i32_11 = arith.constant 0 : i32
      %c0_i32_12 = arith.constant 0 : i32
      %c0_i32_13 = arith.constant 0 : i32
      %c0_i32_14 = arith.constant 0 : i32
      %10 = tpu.memref_slice %arg3[%c0_i32_11, %c0_i32_12, %c0_i32_13, %c0_i32_14] : memref<2x2x8x128xf32, #tpu.memory_space<any>> -> memref<2x1x8x128xf32, #tpu.memory_space<any>>
      %c0_i32_15 = arith.constant 0 : i32
      %c0_i32_16 = arith.constant 0 : i32
      %c0_i32_17 = arith.constant 0 : i32
      %c0_i32_18 = arith.constant 0 : i32
      %11 = tpu.memref_slice %arg4[%c0_i32_15, %c0_i32_16, %c0_i32_17, %c0_i32_18] : memref<2x6x8x128xf32, #tpu.memory_space<any>> -> memref<2x1x8x128xf32, #tpu.memory_space<any>>
      %12 = tpu.memref_slice %arg5[%c1_i32_10] : memref<3x!tpu.dma_semaphore, #tpu.memory_space<semaphore_mem>> -> memref<1x!tpu.dma_semaphore, #tpu.memory_space<semaphore_mem>>
      %13 = tpu.memref_squeeze %12 : memref<1x!tpu.dma_semaphore, #tpu.memory_space<semaphore_mem>> -> memref<!tpu.dma_semaphore, #tpu.memory_space<semaphore_mem>>
      tpu.enqueue_dma source(%10 : memref<2x1x8x128xf32, #tpu.memory_space<any>>) target(%11 : memref<2x1x8x128xf32, #tpu.memory_space<any>>) target_semaphore(%13 : memref<!tpu.dma_semaphore, #tpu.memory_space<semaphore_mem>>)
      %c2_i32 = arith.constant 2 : i32
      %c0_i32_19 = arith.constant 0 : i32
      %c1_i32_20 = arith.constant 1 : i32
      %c0_i32_21 = arith.constant 0 : i32
      %c0_i32_22 = arith.constant 0 : i32
      %14 = tpu.memref_slice %arg3[%c0_i32_19, %c1_i32_20, %c0_i32_21, %c0_i32_22] : memref<2x2x8x128xf32, #tpu.memory_space<any>> -> memref<2x1x8x128xf32, #tpu.memory_space<any>>
      %c0_i32_23 = arith.constant 0 : i32
      %c4_i32 = arith.constant 4 : i32
      %c0_i32_24 = arith.constant 0 : i32
      %c0_i32_25 = arith.constant 0 : i32
      %15 = tpu.memref_slice %arg4[%c0_i32_23, %c4_i32, %c0_i32_24, %c0_i32_25] : memref<2x6x8x128xf32, #tpu.memory_space<any>> -> memref<2x1x8x128xf32, #tpu.memory_space<any>>
      %16 = tpu.memref_slice %arg5[%c2_i32] : memref<3x!tpu.dma_semaphore, #tpu.memory_space<semaphore_mem>> -> memref<1x!tpu.dma_semaphore, #tpu.memory_space<semaphore_mem>>
      %17 = tpu.memref_squeeze %16 : memref<1x!tpu.dma_semaphore, #tpu.memory_space<semaphore_mem>> -> memref<!tpu.dma_semaphore, #tpu.memory_space<semaphore_mem>>
      tpu.enqueue_dma source(%14 : memref<2x1x8x128xf32, #tpu.memory_space<any>>) target(%15 : memref<2x1x8x128xf32, #tpu.memory_space<any>>) target_semaphore(%17 : memref<!tpu.dma_semaphore, #tpu.memory_space<semaphore_mem>>)
      %c0_i32_26 = arith.constant 0 : i32
      %c0_i32_27 = arith.constant 0 : i32
      %c1_i32_28 = arith.constant 1 : i32
      %c0_i32_29 = arith.constant 0 : i32
      %c0_i32_30 = arith.constant 0 : i32
      %18 = tpu.memref_slice %arg1[%c0_i32_27, %c1_i32_28, %c0_i32_29, %c0_i32_30] : memref<2x2x8x128xf32, #tpu.memory_space<any>> -> memref<2x1x8x128xf32, #tpu.memory_space<any>>
      %c0_i32_31 = arith.constant 0 : i32
      %c5_i32_32 = arith.constant 5 : i32
      %c0_i32_33 = arith.constant 0 : i32
      %c0_i32_34 = arith.constant 0 : i32
      %19 = tpu.memref_slice %arg4[%c0_i32_31, %c5_i32_32, %c0_i32_33, %c0_i32_34] : memref<2x6x8x128xf32, #tpu.memory_space<any>> -> memref<2x1x8x128xf32, #tpu.memory_space<any>>
      %20 = tpu.memref_slice %arg5[%c0_i32_26] : memref<3x!tpu.dma_semaphore, #tpu.memory_space<semaphore_mem>> -> memref<1x!tpu.dma_semaphore, #tpu.memory_space<semaphore_mem>>
      %21 = tpu.memref_squeeze %20 : memref<1x!tpu.dma_semaphore, #tpu.memory_space<semaphore_mem>> -> memref<!tpu.dma_semaphore, #tpu.memory_space<semaphore_mem>>
      tpu.wait_dma2 semaphore(%21 : memref<!tpu.dma_semaphore, #tpu.memory_space<semaphore_mem>>) src(%18 : memref<2x1x8x128xf32, #tpu.memory_space<any>>) dst(%19 : memref<2x1x8x128xf32, #tpu.memory_space<any>>)
      %c1_i32_35 = arith.constant 1 : i32
      %c0_i32_36 = arith.constant 0 : i32
      %c0_i32_37 = arith.constant 0 : i32
      %c0_i32_38 = arith.constant 0 : i32
      %c0_i32_39 = arith.constant 0 : i32
      %22 = tpu.memref_slice %arg3[%c0_i32_36, %c0_i32_37, %c0_i32_38, %c0_i32_39] : memref<2x2x8x128xf32, #tpu.memory_space<any>> -> memref<2x1x8x128xf32, #tpu.memory_space<any>>
      %c0_i32_40 = arith.constant 0 : i32
      %c0_i32_41 = arith.constant 0 : i32
      %c0_i32_42 = arith.constant 0 : i32
      %c0_i32_43 = arith.constant 0 : i32
      %23 = tpu.memref_slice %arg4[%c0_i32_40, %c0_i32_41, %c0_i32_42, %c0_i32_43] : memref<2x6x8x128xf32, #tpu.memory_space<any>> -> memref<2x1x8x128xf32, #tpu.memory_space<any>>
      %24 = tpu.memref_slice %arg5[%c1_i32_35] : memref<3x!tpu.dma_semaphore, #tpu.memory_space<semaphore_mem>> -> memref<1x!tpu.dma_semaphore, #tpu.memory_space<semaphore_mem>>
      %25 = tpu.memref_squeeze %24 : memref<1x!tpu.dma_semaphore, #tpu.memory_space<semaphore_mem>> -> memref<!tpu.dma_semaphore, #tpu.memory_space<semaphore_mem>>
      tpu.wait_dma2 semaphore(%25 : memref<!tpu.dma_semaphore, #tpu.memory_space<semaphore_mem>>) src(%22 : memref<2x1x8x128xf32, #tpu.memory_space<any>>) dst(%23 : memref<2x1x8x128xf32, #tpu.memory_space<any>>)
      %c2_i32_44 = arith.constant 2 : i32
      %c0_i32_45 = arith.constant 0 : i32
      %c1_i32_46 = arith.constant 1 : i32
      %c0_i32_47 = arith.constant 0 : i32
      %c0_i32_48 = arith.constant 0 : i32
      %26 = tpu.memref_slice %arg3[%c0_i32_45, %c1_i32_46, %c0_i32_47, %c0_i32_48] : memref<2x2x8x128xf32, #tpu.memory_space<any>> -> memref<2x1x8x128xf32, #tpu.memory_space<any>>
      %c0_i32_49 = arith.constant 0 : i32
      %c4_i32_50 = arith.constant 4 : i32
      %c0_i32_51 = arith.constant 0 : i32
      %c0_i32_52 = arith.constant 0 : i32
      %27 = tpu.memref_slice %arg4[%c0_i32_49, %c4_i32_50, %c0_i32_51, %c0_i32_52] : memref<2x6x8x128xf32, #tpu.memory_space<any>> -> memref<2x1x8x128xf32, #tpu.memory_space<any>>
      %28 = tpu.memref_slice %arg5[%c2_i32_44] : memref<3x!tpu.dma_semaphore, #tpu.memory_space<semaphore_mem>> -> memref<1x!tpu.dma_semaphore, #tpu.memory_space<semaphore_mem>>
      %29 = tpu.memref_squeeze %28 : memref<1x!tpu.dma_semaphore, #tpu.memory_space<semaphore_mem>> -> memref<!tpu.dma_semaphore, #tpu.memory_space<semaphore_mem>>
      tpu.wait_dma2 semaphore(%29 : memref<!tpu.dma_semaphore, #tpu.memory_space<semaphore_mem>>) src(%26 : memref<2x1x8x128xf32, #tpu.memory_space<any>>) dst(%27 : memref<2x1x8x128xf32, #tpu.memory_space<any>>)
    } else {
    }
    return
  }
}

</mosaic_0001>

<bundles_post_ra>
// kernel: tpu_custom_call.1
= control target key start
LH: loop header
LB: loop body
LE: loop exit
PB: predicated region body
PF: predicated region fallthrough
CT: control target
= control target key end

     0   :  { %s263_s12 = smov 0   ;;  %s363_s0 = inlined_call_operand.hbm [shape: f32[2,2,8,128], index: 0, kind: input, shape index: {}]   ;;  %s364_s1 = inlined_call_operand.hbm [shape: f32[2,2,8,128], index: 1, kind: input, shape index: {}]   ;;  %s365_s2 = inlined_call_operand.hbm [shape: f32[2,2,8,128], index: 2, kind: input, shape index: {}]   ;;  %s366_s3 = inlined_call_operand.hbm [shape: f32[2,6,8,128], index: 3, kind: output, shape index: {}]  }
   0x1 LB: > { %p173_p0 = scmp.eq.s32.totalorder %s225_s12, 0  ;;  %s225_s12 = sphi %s263_s12, %s13_s12  }
   0x2   : > { %s19_s15 = scalar_lea.hbm %s366_s3, 384  ;;  %s227_s16 = smov 256  }
   0x3   : > { %147 = sst [smem:[#allocation4]] (%p173_p0), %s227_s16  ;;  %s228_s17 = smov 768  }
   0x4   : > { %148 = sst [smem:[#allocation4 + $0x1]] (%p173_p0), %s228_s17  ;;  %s229_s18 = smov 8  }
   0x5   : > { %149 = sst [smem:[#allocation4 + $0x2]] (%p173_p0), %s229_s18  ;;  %s230_s19 = smov [#allocation2]  }
   0x6   : > { %s231_s20 = smov 131072   ;;  %s232_s21 = smov 0  }
   0x7   : > { %150 = dma.general (%p173_p0), %s363_s0, 256, %s19_s15, %s230_s19, %s231_s20, [#allocation4], %s232_s21, 0  }
   0x8   : > { %151 = sst [smem:[#allocation6]] (%p173_p0), %s227_s16  ;;  %s33_s26 = scalar_lea.hbm %s366_s3, 128 }
   0x9   : > { %152 = sst [smem:[#allocation6 + $0x1]] (%p173_p0), %s228_s17  ;;  %s233_s27 = smov 16  }
   0xa   : > { %153 = sst [smem:[#allocation6 + $0x2]] (%p173_p0), %s233_s27  ;;  %s234_s28 = smov [#allocation2 + $0x1]  }
   0xb   : > { %154 = dma.general (%p173_p0), %s364_s1, 512, %s33_s26, %s234_s28, %s231_s20, [#allocation6], %s232_s21, 0  }
   0xc   : > { %204 = dma.done.wait (%p173_p0), [#allocation2], 256 }
   0xd   : > { %206 = vsyncadd (%p173_p0), [#allocation2], 4294967040 }
   0xe   : > { %208 = dma.done.wait (%p173_p0), [#allocation2 + $0x1], 512 }
   0xf   : > { %210 = vsyncadd (%p173_p0), [#allocation2 + $0x1], 4294966784  ;;  %p174_p1 = scmp.eq.s32.totalorder %s225_s12, 1 }
  0x10   : > { %s62_s6 = scalar_lea.hbm %s363_s0, 128  ;;  %s63_s9 = scalar_lea.hbm %s366_s3, 640 }
  0x11   : > { %s235_s10 = smov 256   ;;  %s236_s11 = smov 768  }
  0x12   : > { %158 = sst [smem:[#allocation8]] (%p174_p1), %s235_s10  ;;  %s237_s13 = smov 8  }
  0x13   : > { %159 = sst [smem:[#allocation8 + $0x1]] (%p174_p1), %s236_s11  ;;  %s238_s14 = smov [#allocation2]  }
  0x14   : > { %160 = sst [smem:[#allocation8 + $0x2]] (%p174_p1), %s237_s13  ;;  %s239_s15 = smov 131072  }
  0x15   : > { %s240_s16 = smov 0   ;;  %s91_s19 = scalar_lea.hbm %s365_s2, 128 }
  0x16   : > { %161 = dma.general (%p174_p1), %s62_s6, 256, %s63_s9, %s238_s14, %s239_s15, [#allocation8], %s240_s16, 0  }
  0x17   : > { %162 = sst [smem:[#allocation10]] (%p174_p1), %s235_s10  ;;  %s92_s22 = scalar_lea.hbm %s366_s3, 512 }
  0x18   : > { %163 = sst [smem:[#allocation10 + $0x1]] (%p174_p1), %s236_s11  ;;  %s241_s23 = smov [#allocation2 + $0x1]  }
  0x19   : > { %164 = sst [smem:[#allocation10 + $0x2]] (%p174_p1), %s237_s13  ;;  %s242_s28 = smov [#allocation2 + $0x2]  }
  0x1a   : > { %165 = dma.general (%p174_p1), %s365_s2, 256, %s366_s3, %s241_s23, %s239_s15, [#allocation10], %s240_s16, 0  }
  0x1b   : > { %166 = sst [smem:[#allocation12]] (%p174_p1), %s235_s10 }
  0x1c   : > { %167 = sst [smem:[#allocation12 + $0x1]] (%p174_p1), %s236_s11 }
  0x1d   : > { %168 = sst [smem:[#allocation12 + $0x2]] (%p174_p1), %s237_s13 }
  0x1e   : > { %169 = dma.general (%p174_p1), %s91_s19, 256, %s92_s22, %s242_s28, %s239_s15, [#allocation12], %s240_s16, 0  }
  0x1f   : > { %212 = dma.done.wait (%p174_p1), [#allocation2], 256 }
  0x20   : > { %214 = vsyncadd (%p174_p1), [#allocation2], 4294967040 }
  0x21   : > { %216 = dma.done.wait (%p174_p1), [#allocation2 + $0x1], 256 }
  0x22   : > { %218 = vsyncadd (%p174_p1), [#allocation2 + $0x1], 4294967040 }
  0x23   : > { %220 = dma.done.wait (%p174_p1), [#allocation2 + $0x2], 256 }
  0x24   : > { %222 = vsyncadd (%p174_p1), [#allocation2 + $0x2], 4294967040  ;;  %s13_s12 = sadd.s32 1, %s225_s12  }
  0x25   : > { %p10_p2 = scmp.ge.s32.totalorder %s13_s12, 2  }
  0x27   :  { %12 = sbr.rel (!%p10_p2) target bundleno = 1 (0x1), region = 48 }
  0x2c   :  { %116 = vsyncmov [#allocation2] }
  0x2f   :  { %s117_s29 = vpop.sfrf %116 }
  0x30   :  { %p143_p3 = scmp.ne.s32.totalorder %s117_s29, 0 }
  0x32   :  { %121 = shalt.err (%p143_p3)  }
  0x33   :  { %123 = vsyncmov [#allocation2 + $0x1] }
  0x36   :  { %s124_s30 = vpop.sfrf %123 }
  0x37   :  { %p144_p4 = scmp.ne.s32.totalorder %s124_s30, 0 }
  0x39   :  { %128 = shalt.err (%p144_p4)  }
  0x3a   :  { %130 = vsyncmov [#allocation2 + $0x2] }
  0x3d   :  { %s131_s4 = vpop.sfrf %130 }
  0x3e   :  { %p145_p5 = scmp.ne.s32.totalorder %s131_s4, 0 }
  0x40   :  { %135 = shalt.err (%p145_p5)  }

</bundles_post_ra>
